<compile_context>
chip_gen: v7x
topology: tpu7x:2x2x1
jax: 0.10.0
libtpu: 0.0.40
codegen_flags: <defaults>
</compile_context>

<pallas_src>
import functools

import jax
import jax.numpy as jnp
from jax.experimental import pallas as pl
from jax.experimental.pallas import tpu as pltpu

_LANE = 128
_SUB = 8
_ROW_TILE = 16 * _LANE     # pad granularity: legal min tile for f32 and bf16
_EPS = 1e-6


def _device_tuning():
    """Returns (target block rows, chip has 2 TensorCores)."""
    try:
        kind = jax.devices()[0].device_kind.lower()
    except Exception:
        kind = ""
    if "v7" in kind:
        return 8192, True      # 2 TCs/chip, 3.2 TB/s HBM -> big blocks, 2 slices
    if "v5p" in kind or "v4" in kind:
        return 4096, True      # megacore parts
    return 2048, False         # v5e / v6e: single TC, bandwidth-bound


def _mae_log_kernel(p_ref, g_ref, o_ref, *, total_steps, steps_per_slice,
                    block_rows, chunk_rows, total_rows, has_overhang):
    pid = pl.program_id(0)     # parallel slice (TensorCore on 2-TC parts)
    tid = pl.program_id(1)     # reduction step within the slice
    step = pid * steps_per_slice + tid

    @pl.when(tid == 0)
    def _init():
        o_ref[...] = jnp.zeros_like(o_ref)

    # Trace-time constants: no code is emitted for cases that cannot occur.
    need_row_mask = (total_rows % block_rows) != 0
    n_chunks = block_rows // chunk_rows
    nsub = chunk_rows // _SUB

    def accumulate():
        # Rows of this block that are in-bounds (only matters for the last,
        # partial block; >= block_rows for every full block).
        row_limit = total_rows - step * block_rows

        def chunk_body(c, carry):
            s_acc, c_acc = carry
            off = pl.multiple_of(c * chunk_rows, chunk_rows)
            p = p_ref[pl.ds(off, chunk_rows), :].astype(jnp.float32)
            g = g_ref[pl.ds(off, chunk_rows), :].astype(jnp.float32)
            p = jnp.maximum(p, 0.0)                      # clamp(prediction, min=0)
            abs_err = jnp.abs(jnp.log(p + _EPS) - jnp.log(g + _EPS))
            valid = g > 0.0                              # mask = gt > 0
            if need_row_mask:
                # Row-only mask for the Pallas-undefined tail of the boundary
                # block; all-true (and cheap) on full blocks.
                rows = jax.lax.broadcasted_iota(
                    jnp.int32, (chunk_rows, _LANE), 0)
                valid = valid & ((rows + off) < row_limit)
            term = jnp.where(valid, abs_err, 0.0)
            cnt = valid.astype(jnp.float32)
            # Fold the chunk to one (8,128) vreg with pure VALU adds
            # (reshape is a free regrouping of sublane-tiled vregs).
            s_acc = s_acc + term.reshape(nsub, _SUB, _LANE).sum(axis=0)
            c_acc = c_acc + cnt.reshape(nsub, _SUB, _LANE).sum(axis=0)
            return s_acc, c_acc

        zero = jnp.zeros((_SUB, _LANE), jnp.float32)
        s_acc, c_acc = jax.lax.fori_loop(
            0, n_chunks, chunk_body, (zero, zero),
            unroll=True if n_chunks <= 16 else 8)

        # Accumulate into the resident output block (fused sum/count planes).
        o_ref[0, 0, :, :] = o_ref[0, 0, :, :] + s_acc
        o_ref[0, 1, :, :] = o_ref[0, 1, :, :] + c_acc

    if has_overhang:
        # The clamped overhang step of the last slice does no compute at all.
        @pl.when(step < total_steps)
        def _():
            accumulate()
    else:
        accumulate()


def mae_log_loss(prediction, gt):
    """prediction, gt: same-shaped float arrays (e.g. [B,1,H,W]) -> scalar."""
    assert prediction.shape == gt.shape, "elementwise loss: shapes must match"

    def prep(x):
        # Stream bf16/f32 in native dtype (upcast per chunk in-kernel); only
        # other dtypes get a host-side cast.
        if x.dtype not in (jnp.dtype(jnp.float32), jnp.dtype(jnp.bfloat16)):
            x = x.astype(jnp.float32)
        return x.reshape(-1)

    p = prep(prediction)
    g = prep(gt)
    n = p.shape[0]

    # Minimal zero-padding so the flat arrays reshape to (rows, 128) with a
    # tile-legal row count.  Padded gt rows are 0, so `gt > 0` masks them --
    # no per-element index mask is needed in the kernel.
    n_pad = pl.cdiv(n, _ROW_TILE) * _ROW_TILE
    if n_pad != n:
        p = jnp.pad(p, (0, n_pad - n))
        g = jnp.pad(g, (0, n_pad - n))
    total_rows = n_pad // _LANE

    target_rows, two_tc = _device_tuning()
    block_rows = min(target_rows, total_rows)
    total_steps = pl.cdiv(total_rows, block_rows)

    # Two parallel slices only on parts with 2 TensorCores.
    n_slices = 2 if (two_tc and total_steps >= 2) else 1
    steps_per_slice = pl.cdiv(total_steps, n_slices)
    has_overhang = n_slices * steps_per_slice != total_steps

    # Chunk rows for the inner loop (block_rows is always a multiple of 16).
    chunk_rows = next(c for c in (128, 64, 32, 16) if block_rows % c == 0)

    p2 = p.reshape(total_rows, _LANE)
    g2 = g.reshape(total_rows, _LANE)

    def in_map(pi, ti):
        step = pi * steps_per_slice + ti
        if has_overhang:
            # Clamp the (single) overhang step onto a real block; its compute
            # is skipped inside the kernel.
            step = jnp.minimum(step, total_steps - 1)
        return (step, 0)

    in_spec = pl.BlockSpec((block_rows, _LANE), in_map)
    out_spec = pl.BlockSpec((1, 2, _SUB, _LANE), lambda pi, ti: (pi, 0, 0, 0))

    kernel = functools.partial(
        _mae_log_kernel,
        total_steps=total_steps, steps_per_slice=steps_per_slice,
        block_rows=block_rows, chunk_rows=chunk_rows,
        total_rows=total_rows, has_overhang=has_overhang)

    # 2 inputs x 2 buffers of (block_rows,128); raise the scoped limit only
    # when the big v7x blocks need it (stays well inside v7x's 64 MiB VMEM).
    vmem_limit = 48 * 1024 * 1024 if block_rows >= 8192 else 32 * 1024 * 1024

    partials = pl.pallas_call(
        kernel,
        out_shape=jax.ShapeDtypeStruct((n_slices, 2, _SUB, _LANE), jnp.float32),
        grid_spec=pltpu.PrefetchScalarGridSpec(
            num_scalar_prefetch=0,
            grid=(n_slices, steps_per_slice),
            in_specs=[in_spec, in_spec],
            out_specs=out_spec,
        ),
        compiler_params=pltpu.CompilerParams(
            dimension_semantics=("parallel", "arbitrary"),
            vmem_limit_bytes=vmem_limit),
    )(p2, g2)

    # Tiny epilogue: one reduction + divide over (n_slices, 2, 8, 128).
    total_sum = jnp.sum(partials[:, 0])
    total_cnt = jnp.sum(partials[:, 1])
    # NOTE: returns NaN if no element has gt > 0, matching the PyTorch module.
    return total_sum / total_cnt


def _ref_loss(prediction, gt):
    p = jnp.maximum(prediction.astype(jnp.float32), 0.0)
    g = gt.astype(jnp.float32)
    abs_err = jnp.abs(jnp.log(p + _EPS) - jnp.log(g + _EPS))
    mask = g > 0.0
    return jnp.sum(jnp.where(mask, abs_err, 0.0)) / jnp.sum(mask)


if __name__ == "__main__":
    key = jax.random.PRNGKey(0)
    k1, k2, k3, k4 = jax.random.split(key, 4)

    # Small case (required example shape): exercises the single-block path.
    B, H, W = 2, 16, 16
    prediction = jax.random.normal(k1, (B, 1, H, W), dtype=jnp.float32)
    gt = jax.random.normal(k2, (B, 1, H, W), dtype=jnp.float32)  # mixed-sign mask
    loss = mae_log_loss(prediction, gt)
    jax.block_until_ready(loss)
    ref = _ref_loss(prediction, gt)
    assert jnp.allclose(loss, ref, rtol=1e-4, atol=1e-5), (loss, ref)

    # Moderate case: exercises host padding, multi-step reduction and the
    # partial-boundary-block row mask.
    prediction2 = jax.random.normal(k3, (2, 1, 384, 500), dtype=jnp.float32)
    gt2 = jax.random.normal(k4, (2, 1, 384, 500), dtype=jnp.float32)
    loss2 = mae_log_loss(prediction2, gt2)
    jax.block_until_ready(loss2)
    ref2 = _ref_loss(prediction2, gt2)
    assert jnp.allclose(loss2, ref2, rtol=1e-4, atol=1e-5), (loss2, ref2)

    print("KERNEL_OK")
</pallas_src>

<mosaic_0001>
module attributes {stable_mosaic.version = 11 : i64} {
  func.func @_mae_log_kernel(%arg0: i32, %arg1: i32, %arg2: memref<16x128xf32, #tpu.memory_space<vmem>>, %arg3: memref<16x128xf32, #tpu.memory_space<vmem>>, %arg4: memref<1x2x8x128xf32, #tpu.memory_space<vmem>>) attributes {dimension_semantics = [#tpu.dimension_semantics<parallel>, #tpu.dimension_semantics<arbitrary>], iteration_bounds = array<i64: 1, 1>, scalar_prefetch = 0 : i64, scratch_operands = 0 : i64, tpu.core_type = #tpu.core_type<tc>, window_params = [{transform_indices = @transform_0, window_bounds = array<i64: 16, 128>}, {transform_indices = @transform_1, window_bounds = array<i64: 16, 128>}, {transform_indices = @transform_2, window_bounds = array<i64: 1, 2, 8, 128>}]} {
    %c0_i32 = arith.constant 0 : i32
    %0 = arith.cmpi eq, %arg1, %c0_i32 : i32
    %1 = arith.extui %0 : i1 to i32
    %c0_i32_0 = arith.constant 0 : i32
    %2 = arith.cmpi ne, %1, %c0_i32_0 : i32
    scf.if %2 {
      %cst_25 = arith.constant 0.000000e+00 : f32
      %44 = vector.broadcast %cst_25 : f32 to vector<1x2x8x128xf32>
      %c0_26 = arith.constant 0 : index
      %c0_27 = arith.constant 0 : index
      %c0_28 = arith.constant 0 : index
      %c0_29 = arith.constant 0 : index
      %45 = vector.load %arg4[%c0_26, %c0_27, %c0_28, %c0_29] : memref<1x2x8x128xf32, #tpu.memory_space<vmem>>, vector<1x2x8x128xf32>
      tpu.vector_store %arg4[%c0_26, %c0_27, %c0_28, %c0_29], %44 {strides = array<i32>} : memref<1x2x8x128xf32, #tpu.memory_space<vmem>>, vector<1x2x8x128xf32>,
    } else {
    }
    %cst = arith.constant 0.000000e+00 : f32
    %3 = vector.broadcast %cst : f32 to vector<8x128xf32>
    %c0_i32_1 = arith.constant 0 : i32
    %c16_i32 = arith.constant 16 : i32
    %4 = arith.muli %c0_i32_1, %c16_i32 : i32
    %5 = tpu.assume_multiple %4, 16 : i32
    %6 = arith.index_cast %5 : i32 to index
    %c0 = arith.constant 0 : index
    %7 = vector.load %arg2[%6, %c0] : memref<16x128xf32, #tpu.memory_space<vmem>>, vector<16x128xf32>
    %8 = arith.index_cast %5 : i32 to index
    %c0_2 = arith.constant 0 : index
    %9 = vector.load %arg3[%8, %c0_2] : memref<16x128xf32, #tpu.memory_space<vmem>>, vector<16x128xf32>
    %cst_3 = arith.constant 0.000000e+00 : f32
    %10 = vector.broadcast %cst_3 : f32 to vector<16x128xf32>
    %11 = arith.maximumf %7, %10 : vector<16x128xf32>
    %cst_4 = arith.constant 9.99999997E-7 : f32
    %12 = vector.broadcast %cst_4 : f32 to vector<16x128xf32>
    %13 = arith.addf %11, %12 : vector<16x128xf32>
    %14 = math.log %13 : vector<16x128xf32>
    %cst_5 = arith.constant 9.99999997E-7 : f32
    %15 = vector.broadcast %cst_5 : f32 to vector<16x128xf32>
    %16 = arith.addf %9, %15 : vector<16x128xf32>
    %17 = math.log %16 : vector<16x128xf32>
    %18 = arith.subf %14, %17 : vector<16x128xf32>
    %19 = math.absf %18 : vector<16x128xf32>
    %cst_6 = arith.constant 0.000000e+00 : f32
    %20 = vector.broadcast %cst_6 : f32 to vector<16x128xf32>
    %21 = arith.cmpf ogt, %9, %20 : vector<16x128xf32>
    %cst_7 = arith.constant 0.000000e+00 : f32
    %22 = vector.broadcast %cst_7 : f32 to vector<16x128xf32>
    %23 = arith.select %21, %19, %22 : vector<16x128xi1>, vector<16x128xf32>
    %24 = arith.extui %21 : vector<16x128xi1> to vector<16x128xi32>
    %25 = arith.sitofp %24 : vector<16x128xi32> to vector<16x128xf32>
    %26 = vector.shape_cast %23 : vector<16x128xf32> to vector<2x8x128xf32>
    %cst_8 = arith.constant dense<0.000000e+00> : vector<8x128xf32>
    %27 = vector.multi_reduction <add>, %26, %cst_8 [0] : vector<2x8x128xf32> to vector<8x128xf32>
    %28 = arith.addf %3, %27 : vector<8x128xf32>
    %29 = vector.shape_cast %25 : vector<16x128xf32> to vector<2x8x128xf32>
    %cst_9 = arith.constant dense<0.000000e+00> : vector<8x128xf32>
    %30 = vector.multi_reduction <add>, %29, %cst_9 [0] : vector<2x8x128xf32> to vector<8x128xf32>
    %31 = arith.addf %3, %30 : vector<8x128xf32>
    %c1_i32 = arith.constant 1 : i32
    %c0_10 = arith.constant 0 : index
    %c0_11 = arith.constant 0 : index
    %c0_12 = arith.constant 0 : index
    %c0_13 = arith.constant 0 : index
    %32 = vector.load %arg4[%c0_10, %c0_11, %c0_12, %c0_13] : memref<1x2x8x128xf32, #tpu.memory_space<vmem>>, vector<1x1x8x128xf32>
    %33 = vector.shape_cast %32 : vector<1x1x8x128xf32> to vector<8x128xf32>
    %34 = arith.addf %33, %28 : vector<8x128xf32>
    %c0_14 = arith.constant 0 : index
    %c0_15 = arith.constant 0 : index
    %c0_16 = arith.constant 0 : index
    %c0_17 = arith.constant 0 : index
    %35 = vector.load %arg4[%c0_14, %c0_15, %c0_16, %c0_17] : memref<1x2x8x128xf32, #tpu.memory_space<vmem>>, vector<1x1x8x128xf32>
    %36 = vector.shape_cast %35 : vector<1x1x8x128xf32> to vector<8x128xf32>
    %37 = vector.shape_cast %34 : vector<8x128xf32> to vector<1x1x8x128xf32>
    tpu.vector_store %arg4[%c0_14, %c0_15, %c0_16, %c0_17], %37 {strides = array<i32>} : memref<1x2x8x128xf32, #tpu.memory_space<vmem>>, vector<1x1x8x128xf32>,
    %c0_18 = arith.constant 0 : index
    %c1 = arith.constant 1 : index
    %c0_19 = arith.constant 0 : index
    %c0_20 = arith.constant 0 : index
    %38 = vector.load %arg4[%c0_18, %c1, %c0_19, %c0_20] : memref<1x2x8x128xf32, #tpu.memory_space<vmem>>, vector<1x1x8x128xf32>
    %39 = vector.shape_cast %38 : vector<1x1x8x128xf32> to vector<8x128xf32>
    %40 = arith.addf %39, %31 : vector<8x128xf32>
    %c0_21 = arith.constant 0 : index
    %c1_22 = arith.constant 1 : index
    %c0_23 = arith.constant 0 : index
    %c0_24 = arith.constant 0 : index
    %41 = vector.load %arg4[%c0_21, %c1_22, %c0_23, %c0_24] : memref<1x2x8x128xf32, #tpu.memory_space<vmem>>, vector<1x1x8x128xf32>
    %42 = vector.shape_cast %41 : vector<1x1x8x128xf32> to vector<8x128xf32>
    %43 = vector.shape_cast %40 : vector<8x128xf32> to vector<1x1x8x128xf32>
    tpu.vector_store %arg4[%c0_21, %c1_22, %c0_23, %c0_24], %43 {strides = array<i32>} : memref<1x2x8x128xf32, #tpu.memory_space<vmem>>, vector<1x1x8x128xf32>,
    return
  }
  func.func @transform_0(%arg0: i32, %arg1: i32) -> (i32, i32) {
    %c1_i32 = arith.constant 1 : i32
    %0 = arith.muli %arg0, %c1_i32 : i32
    %1 = arith.addi %0, %arg1 : i32
    %c0_i32 = arith.constant 0 : i32
    %c0_i32_0 = arith.constant 0 : i32
    return %1, %c0_i32 : i32, i32
  }
  func.func @transform_1(%arg0: i32, %arg1: i32) -> (i32, i32) {
    %c1_i32 = arith.constant 1 : i32
    %0 = arith.muli %arg0, %c1_i32 : i32
    %1 = arith.addi %0, %arg1 : i32
    %c0_i32 = arith.constant 0 : i32
    %c0_i32_0 = arith.constant 0 : i32
    return %1, %c0_i32 : i32, i32
  }
  func.func @transform_2(%arg0: i32, %arg1: i32) -> (i32, i32, i32, i32) {
    %c0_i32 = arith.constant 0 : i32
    %c0_i32_0 = arith.constant 0 : i32
    %c0_i32_1 = arith.constant 0 : i32
    %c0_i32_2 = arith.constant 0 : i32
    return %arg0, %c0_i32, %c0_i32_0, %c0_i32_1 : i32, i32, i32, i32
  }
}

</mosaic_0001>

<bundles_post_ra>
// kernel: tpu_custom_call.1
= control target key start
LH: loop header
LB: loop body
LE: loop exit
PB: predicated region body
PF: predicated region fallthrough
CT: control target
= control target key end

     0   :  { %7 = vsyncpa [#allocation3], 0  ;;  %s275_s0 = inlined_call_operand.hbm [shape: f32[16,128], index: 0, kind: input, shape index: {}]   ;;  %s276_s1 = inlined_call_operand.hbm [shape: f32[16,128], index: 1, kind: input, shape index: {}]   ;;  %s277_s2 = inlined_call_operand.hbm [shape: f32[1,2,8,128], index: 2, kind: output, shape index: {}]  }
   0x1   :  { %8 = vsyncpa [#allocation6], 0 }
   0x2   :  { %9 = vsyncpa [#allocation4], 0  ;;  %s205_s9 = smov [#allocation2]   ;;  %s133_s13 = scalar_lea.hbm %s275_s0, 256 }
   0x3   :  { %s19_s10 = sshll.u32 %s205_s9, 4  ;;  %p134_p0 = scmp.ne.s32.totalorder %s275_s0, %s133_s13  ;;  %s20_s10 = int_to_ptr.vmem [resolvable:$true] %s19_s10 }
   0x4   :  { %p137_p1 = scmp.lt.u32.totalorder %s133_s13, %s275_s0 }
   0x6   :  { %p139_p2 = pnand %p137_p1, %p134_p0 }
   0x8   :  { %142 = shalt.err (!%p139_p2)
}
   0x9   :  { %s143_s18 = scalar_lea.vmem %s20_s10, 256  ;;  %p148_p4 = scmp.lt.s32.totalorder %s20_s10, %s20_s10 }
   0xa   :  { %p144_p3 = scmp.ne.s32.totalorder %s20_s10, %s143_s18  ;;  %p149_p5 = scmp.lt.s32.totalorder %s143_s18, %s143_s18 }
   0xc   :  { %p150_p6 = por %p149_p5, %p148_p4 }
   0xe   :  { %p151_p7 = pnand %p150_p6, %p144_p3 }
  0x10   :  { %154 = shalt.err (!%p151_p7)
}
  0x11   :  { %s206_s19 = smov 128   ;;  %s207_s20 = smov 8  }
  0x12   :  { %25 = dma.hbm_to_vmem [thread:$0]  %s275_s0, 256, %s20_s10, [#allocation3], %s206_s19, %s206_s19, %s207_s20  }
  0x13   :  { %s208_s23 = smov [#allocation5]   ;;  %s155_s27 = scalar_lea.hbm %s276_s1, 256 }
  0x14   :  { %s35_s24 = sshll.u32 %s208_s23, 4  ;;  %p156_p8 = scmp.ne.s32.totalorder %s276_s1, %s155_s27  ;;  %s36_s24 = int_to_ptr.vmem [resolvable:$true] %s35_s24 }
  0x15   :  { %p159_p9 = scmp.lt.u32.totalorder %s155_s27, %s276_s1 }
  0x17   :  { %p161_p10 = pnand %p159_p9, %p156_p8 }
  0x19   :  { %164 = shalt.err (!%p161_p10)
}
  0x1a   :  { %s165_s4 = scalar_lea.vmem %s36_s24, 256  ;;  %p170_p12 = scmp.lt.s32.totalorder %s36_s24, %s36_s24 }
  0x1b   :  { %p166_p11 = scmp.ne.s32.totalorder %s36_s24, %s165_s4  ;;  %p171_p13 = scmp.lt.s32.totalorder %s165_s4, %s165_s4 }
  0x1d   :  { %p172_p0 = por %p171_p13, %p170_p12 }
  0x1f   :  { %p173_p1 = pnand %p172_p0, %p166_p11 }
  0x21   :  { %176 = shalt.err (!%p173_p1)
}
  0x22   :  { %41 = dma.hbm_to_vmem [thread:$0]  %s276_s1, 256, %s36_s24, [#allocation6], %s206_s19, %s206_s19, %s207_s20  }
  0x23   :  { %199 = dma.done.wait [#allocation3], 256  }
  0x24   :  { %200 = vsyncadd [#allocation3], 4294967040 }
  0x25   :  { %201 = dma.done.wait [#allocation6], 256  }
  0x26   :  { %202 = vsyncadd [#allocation6], 4294967040  ;;  %v58_v0 = vld [vmem:[#allocation2] sm:$0xff]  ;;  %v59_v1 = vld [vmem:[#allocation2 + $0x8] sm:$0xff]  ;;  %v209_v8 = vmov 0.0   ;;  %s210_s1 = smov [#allocation7]  }
  0x27   :  { %v60_v2 = vld [vmem:[#allocation5] sm:$0xff]  ;;  %v61_v3 = vld [vmem:[#allocation5 + $0x8] sm:$0xff]  ;;  %v62_v4 = vmax.f32 %v58_v0, 0.0  ;;  %v63_v5 = vmax.f32 %v59_v1, 0.0  ;;  %s104_s6 = sshll.u32 %s210_s1, 4  ;;  %s105_s6 = int_to_ptr.vmem [resolvable:$true] %s104_s6 }
  0x28   :  { %v70_v6 = vadd.f32 1e-06, %v60_v2  ;;  %vm80_vm0 = vcmp.gt.f32.partialorder %v60_v2, 0.0  ;;  %v71_v7 = vadd.f32 1e-06, %v61_v3  ;;  %vm81_vm1 = vcmp.gt.f32.partialorder %v61_v3, 0.0  ;;  %p182_p3 = scmp.lt.s32.totalorder %s105_s6, %s105_s6 }
  0x29   :  { %v117_v9 = vsel %vm80_vm0, 1.0, %v209_v8  ;;  %v64_v10 = vadd.f32 1e-06, %v62_v4  ;;  %v65_v11 = vadd.f32 1e-06, %v63_v5  ;;  %v118_v12 = vsel %vm81_vm1, 1.0, %v209_v8 }
  0x2a   :  { %125 = vlog2.f32 %v70_v6  ;;  %v90_v13 = vadd.f32 %v118_v12, %v117_v9  ;;  %s177_s7 = scalar_lea.vmem %s105_s6, 256 }
  0x2b   :  { %127 = vlog2.f32 %v71_v7  ;;  %p178_p2 = scmp.ne.s32.totalorder %s105_s6, %s177_s7  ;;  %p183_p4 = scmp.lt.s32.totalorder %s177_s7, %s177_s7 }
  0x2c   :  { %129 = vlog2.f32 %v64_v10  ;;  %98 = vst [vmem:[#allocation7 + $0x8] sm:$0xff] %v90_v13 }
  0x2d   :  { %131 = vlog2.f32 %v65_v11  ;;  %p184_p5 = por %p183_p4, %p182_p3 }
  0x2f   :  { %p185_p6 = pnand %p184_p5, %p178_p2 }
  0x34   :  { %v126_v14 = vpop.eup %125 }
  0x35   :  { %v128_v15 = vpop.eup %127  ;;  %v73_v16 = vmul.f32 0.6931472, %v126_v14 }
  0x36   :  { %v130_v17 = vpop.eup %129  ;;  %v75_v18 = vmul.f32 0.6931472, %v128_v15 }
  0x37   :  { %v132_v19 = vpop.eup %131  ;;  %v67_v20 = vmul.f32 0.6931472, %v130_v17 }
  0x38   :  { %v69_v21 = vmul.f32 0.6931472, %v132_v19 }
  0x39   :  { %v76_v22 = vsub.f32 %v67_v20, %v73_v16 }
  0x3a   :  { %v77_v23 = vsub.f32 %v69_v21, %v75_v18 }
  0x3b   :  { %v78_v24 = vand.u32 2147483647, %v76_v22 }
  0x3c   :  { %v79_v25 = vand.u32 2147483647, %v77_v23 }
  0x3d   :  { %v82_v26 = vsel %vm80_vm0, %v78_v24, 0.0 }
  0x3e   :  { %v83_v27 = vsel %vm81_vm1, %v79_v25, 0.0 }
  0x3f   :  { %v88_v28 = vadd.f32 %v83_v27, %v82_v26 }
  0x41   :  { %94 = vst [vmem:[#allocation7] sm:$0xff] %v88_v28 }
  0x42   :  { %188 = shalt.err (!%p185_p6)
}
  0x43   :  { %s189_s10 = scalar_lea.hbm %s277_s2, 256 }
  0x44   :  { %p190_p7 = scmp.ne.s32.totalorder %s277_s2, %s189_s10  ;;  %p193_p8 = scmp.lt.u32.totalorder %s189_s10, %s277_s2 }
  0x46   :  { %p195_p9 = pnand %p193_p8, %p190_p7 }
  0x48   :  { %198 = shalt.err (!%p195_p9)
}
  0x49   :  { %110 = dma.vmem_to_hbm [thread:$0]  %s105_s6, 256, %s277_s2, [#allocation4], %s206_s19, %s206_s19, %s207_s20  }
  0x4a   :  { %203 = dma.done.wait [#allocation4], 256  }
  0x4b   :  { %204 = vsyncadd [#allocation4], 4294967040 }
  0x4c   :  { %114 = vsyncpa [#allocation3], 1 }
  0x4d   :  { %115 = vsyncpa [#allocation6], 1 }
  0x4e   :  { %116 = vsyncpa [#allocation4], 1 }

</bundles_post_ra>
